<compile_context>
chip_gen: v6e
topology: v6e:2x2x1
jax: 0.10.0
libtpu: 0.0.40
codegen_flags: <defaults>
</compile_context>

<pallas_src>
import functools
import math

import jax
import jax.numpy as jnp
from jax.experimental import pallas as pl
from jax.experimental.pallas import tpu as pltpu

LANE = 128
# Desired (large-graph) tile sizes -- sweep 512-1024 per generation; on v7x the
# reduction tile can go to 1024 (3.2 TB/s HBM; tiles stay << 64 MiB VMEM).
DESIRED_TILE_M = 512     # aggregation destination-row tile ("parallel" axis)
DESIRED_TILE_K = 512     # aggregation source-node reduction tile ("arbitrary")
DESIRED_TILE_R = 1024    # per-node linear row tile
Z_RESIDENT_BUDGET = 8 * 1024 * 1024   # keep Z fully VMEM-resident when it fits


def _round_up(n, m):
    return ((n + m - 1) // m) * m


def _pad2d(a, rows, cols, value=0.0):
    return jnp.pad(a, ((0, rows - a.shape[0]), (0, cols - a.shape[1])),
                   constant_values=value)


def _pick_tile(n, desired, min_tile=LANE, prefer_multi=False):
    """Largest multiple of min_tile <= desired that covers n; optionally shrink
    so the (parallel) grid axis keeps >= 2 steps for megacore sharding."""
    n_min = _round_up(max(n, 1), min_tile)
    t = max(min_tile, min((desired // min_tile) * min_tile, n_min))
    if prefer_multi and _round_up(n, t) // t < 2:
        half = (t // 2 // min_tile) * min_tile
        if half >= min_tile:
            t = half
    return t


def _compiler_params(semantics, vmem_bytes_needed):
    # Explicit scoped-VMEM limit: v5e default is only 16 MiB; cap at 64 MiB
    # (v7x physical) so the request is legal on every generation.
    limit = int(min(64 * 1024 * 1024, max(2 * vmem_bytes_needed, 32 * 1024 * 1024)))
    return pltpu.CompilerParams(dimension_semantics=semantics,
                                vmem_limit_bytes=limit)


# ---------------------------------------------------------------------------
# Kernel 1: per-node linear  Z = X @ W^T   (row-parallel, bf16 MXU, f32 acc)
# ---------------------------------------------------------------------------
def _linear_kernel(x_ref, wt_ref, o_ref):
    o_ref[...] = jnp.dot(x_ref[...], wt_ref[...],
                         preferred_element_type=jnp.float32).astype(o_ref.dtype)


def node_linear(x_bf16, wt_bf16, *, tile_r):
    n, c_in = x_bf16.shape
    c_out = wt_bf16.shape[1]
    assert n % tile_r == 0
    vmem = 2 * tile_r * c_in * 2 + 2 * c_in * c_out * 2 + 2 * tile_r * c_out * 2
    cost = pl.CostEstimate(
        flops=2 * n * c_in * c_out, transcendentals=0,
        bytes_accessed=n * c_in * 2 + c_in * c_out * 2 + n * c_out * 2)
    return pl.pallas_call(
        _linear_kernel,
        out_shape=jax.ShapeDtypeStruct((n, c_out), jnp.bfloat16),
        grid=(n // tile_r,),
        in_specs=[
            pl.BlockSpec((tile_r, c_in), lambda r: (r, 0)),
            pl.BlockSpec((c_in, c_out), lambda r: (0, 0)),   # weights stay resident
        ],
        out_specs=pl.BlockSpec((tile_r, c_out), lambda r: (r, 0)),
        compiler_params=_compiler_params(("parallel",), vmem),
        cost_estimate=cost,
    )(x_bf16, wt_bf16)


# ---------------------------------------------------------------------------
# Kernel 2: mean aggregation  out = act( (A_cnt @ Z) * inv_deg + bias ) [ @ W2^T ]
#           M/K tiled grid, f32 VMEM accumulator, finalize on last K step.
#           A is streamed as int8 and cast to bf16 in-kernel (VPU has slack).
# ---------------------------------------------------------------------------
def _agg_kernel(*refs, activation, c_valid, tile_k, z_resident, fused):
    if fused:
        a_ref, z_ref, invdeg_ref, b_ref, w2t_ref, o_ref, acc_ref = refs
    else:
        a_ref, z_ref, invdeg_ref, b_ref, o_ref, acc_ref = refs
        w2t_ref = None
    k = pl.program_id(1)

    @pl.when(k == 0)
    def _():
        acc_ref[...] = jnp.zeros_like(acc_ref)

    # int8 edge counts -> exact bf16 (two-step cast; free filler under mem-bound)
    a_blk = a_ref[...].astype(jnp.float32).astype(jnp.bfloat16)
    if z_resident:
        start = pl.multiple_of(k * tile_k, tile_k)
        z_blk = z_ref[pl.ds(start, tile_k), :]
    else:
        z_blk = z_ref[...]
    acc_ref[...] += jnp.dot(a_blk, z_blk, preferred_element_type=jnp.float32)

    @pl.when(k == pl.num_programs(1) - 1)
    def _():
        h = acc_ref[...] * invdeg_ref[...] + b_ref[...]       # f32 mean + bias
        if activation == "relu":
            h = jnp.maximum(h, 0.0)
            if fused:
                # Fused next-layer per-node linear: emit h @ W2^T directly.
                o_ref[...] = jnp.dot(h.astype(jnp.bfloat16), w2t_ref[...],
                                     preferred_element_type=jnp.float32
                                     ).astype(o_ref.dtype)
            else:
                o_ref[...] = h.astype(o_ref.dtype)
        else:  # masked log_softmax over the first c_valid (real) classes
            col = jax.lax.broadcasted_iota(jnp.int32, h.shape, 1)
            valid = col < c_valid
            z = jnp.where(valid, h, -jnp.inf)
            m = jnp.max(z, axis=1, keepdims=True)
            zs = z - m
            e = jnp.where(valid, jnp.exp(zs), 0.0)
            lse = jnp.log(jnp.sum(e, axis=1, keepdims=True))
            o_ref[...] = (zs - lse).astype(o_ref.dtype)


def sage_aggregate(a_i8, z_bf16, invdeg_f32, bias_f32, *, activation,
                   out_dtype, tile_m, tile_k, c_valid=0, w2t_bf16=None):
    m_pad, k_pad = a_i8.shape
    c = z_bf16.shape[1]
    assert m_pad % tile_m == 0 and k_pad % tile_k == 0
    fused = w2t_bf16 is not None
    c_out = w2t_bf16.shape[1] if fused else c

    z_resident = (k_pad * c * 2) <= Z_RESIDENT_BUDGET
    if z_resident:
        z_spec = pl.BlockSpec((k_pad, c), lambda m, k: (0, 0))   # VMEM-resident Z
        z_vmem = 2 * k_pad * c * 2
    else:
        z_spec = pl.BlockSpec((tile_k, c), lambda m, k: (k, 0))  # per-k block
        z_vmem = 2 * tile_k * c * 2

    in_specs = [
        pl.BlockSpec((tile_m, tile_k), lambda m, k: (m, k)),     # int8 A tile stream
        z_spec,
        pl.BlockSpec((tile_m, 1), lambda m, k: (m, 0)),          # 1/deg, k-resident
        pl.BlockSpec((1, c), lambda m, k: (0, 0)),               # bias, resident
    ]
    args = [a_i8, z_bf16, invdeg_f32, bias_f32]
    if fused:
        in_specs.append(pl.BlockSpec((c, c_out), lambda m, k: (0, 0)))  # W2^T resident
        args.append(w2t_bf16)

    out_bytes = jnp.dtype(out_dtype).itemsize
    vmem = (2 * tile_m * tile_k * 1 + z_vmem + 2 * tile_m * 4 + 2 * c * 4
            + (2 * c * c_out * 2 if fused else 0)
            + 2 * tile_m * c_out * out_bytes + tile_m * c * 4)
    cost = pl.CostEstimate(
        flops=2 * m_pad * k_pad * c + (2 * m_pad * c * c_out if fused else 0),
        transcendentals=(m_pad * c if activation == "log_softmax" else 0),
        bytes_accessed=(m_pad * k_pad * 1 + k_pad * c * 2
                        + m_pad * c_out * out_bytes + m_pad * 4 + c * 4
                        + (c * c_out * 2 if fused else 0)))

    kernel = functools.partial(_agg_kernel, activation=activation,
                               c_valid=c_valid, tile_k=tile_k,
                               z_resident=z_resident, fused=fused)
    return pl.pallas_call(
        kernel,
        out_shape=jax.ShapeDtypeStruct((m_pad, c_out), out_dtype),
        grid=(m_pad // tile_m, k_pad // tile_k),
        in_specs=in_specs,
        out_specs=pl.BlockSpec((tile_m, c_out), lambda m, k: (m, 0)),
        scratch_shapes=[pltpu.VMEM((tile_m, c), jnp.float32)],
        compiler_params=_compiler_params(("parallel", "arbitrary"), vmem),
        cost_estimate=cost,
    )(*args)


# ---------------------------------------------------------------------------
# Full SAGENet forward
# ---------------------------------------------------------------------------
def sagenet_forward(x, a1_cnt, invdeg1, w1, b1, a2_cnt, invdeg2, w2, b2):
    """x: [N0, Cin] node features already gathered by n_id.
    a1_cnt: [N1, N0] unnormalized edge-count adjacency, invdeg1: [N1] = 1/deg.
    a2_cnt: [N2, N1], invdeg2: [N2].
    w1: [C_hid, Cin], b1: [C_hid];  w2: [C_out, C_hid], b2: [C_out]."""
    n0, c_in = x.shape
    n1 = a1_cnt.shape[0]
    n2 = a2_cnt.shape[0]
    c_hid = w1.shape[0]
    c_out = w2.shape[0]
    c_hid_pad = _round_up(max(c_hid, LANE), LANE)   # lane-dense hidden stores / MXU N
    c_out_pad = _round_up(max(c_out, LANE), LANE)   # lane-dense class stores

    # Per-layer tiles (parallel M axes try to keep >=2 grid steps -> megacore).
    tile_m1 = _pick_tile(n1, DESIRED_TILE_M, prefer_multi=True)
    tile_k1 = _pick_tile(n0, DESIRED_TILE_K)
    tile_m2 = _pick_tile(n2, DESIRED_TILE_M, prefer_multi=True)
    tile_k2 = _pick_tile(n1, DESIRED_TILE_K)
    tile_r0 = _pick_tile(n0, DESIRED_TILE_R)

    n0p = _round_up(n0, (tile_k1 * tile_r0) // math.gcd(tile_k1, tile_r0))
    n1p = _round_up(n1, (tile_m1 * tile_k2) // math.gcd(tile_m1, tile_k2))
    n2p = _round_up(n2, tile_m2)

    bf = jnp.bfloat16
    x_p = _pad2d(x.astype(bf), n0p, c_in)
    # Adjacency as int8 edge counts (exact for counts <= 127); cast to bf16
    # inside the kernel -> half the HBM bytes on the dominant stream.
    a1_p = _pad2d(a1_cnt.astype(jnp.int8), n1p, n0p)
    a2_p = _pad2d(a2_cnt.astype(jnp.int8), n2p, n1p)
    invd1_p = _pad2d(invdeg1.reshape(-1, 1).astype(jnp.float32), n1p, 1, 1.0)
    invd2_p = _pad2d(invdeg2.reshape(-1, 1).astype(jnp.float32), n2p, 1, 1.0)
    w1t_p = _pad2d(w1.T.astype(bf), c_in, c_hid_pad)                 # [Cin, Chid_pad]
    b1_p = _pad2d(b1.reshape(1, -1).astype(jnp.float32), 1, c_hid_pad)
    w2t_p = _pad2d(w2.T.astype(bf), c_hid_pad, c_out_pad)            # [Chid_pad, Cout_pad]
    b2_p = _pad2d(b2.reshape(1, -1).astype(jnp.float32), 1, c_out_pad)

    # ---- layer 1 (+ fused layer-2 linear):
    #      h1w2 = relu( (A1 @ (X @ W1^T)) * 1/deg1 + b1 ) @ W2^T
    xw1 = node_linear(x_p, w1t_p, tile_r=tile_r0)                    # [N0p, Chid_pad] bf16
    h1w2 = sage_aggregate(a1_p, xw1, invd1_p, b1_p,
                          activation="relu", out_dtype=jnp.bfloat16,
                          tile_m=tile_m1, tile_k=tile_k1,
                          w2t_bf16=w2t_p)                            # [N1p, Cout_pad] bf16
    # NOTE: padded rows of h1w2 are nonzero garbage (relu(b1) @ W2^T); they are
    # annihilated by the zero padded columns of a2_p in the next kernel.
    # TODO(synk): dropout(p=0.5) implemented as identity (eval-mode semantics).

    # ---- layer 2: out = log_softmax( (A2 @ h1w2) * 1/deg2 + b2 )
    out_p = sage_aggregate(a2_p, h1w2, invd2_p, b2_p,
                           activation="log_softmax", c_valid=c_out,
                           out_dtype=jnp.float32,
                           tile_m=tile_m2, tile_k=tile_k2)           # [N2p, Cout_pad] f32
    return out_p[:n2, :c_out]


# ---------------------------------------------------------------------------
# Plain-JAX glue + references
# ---------------------------------------------------------------------------
def build_adjacency(edge_index, num_src, num_dst):
    """Unnormalized edge-count adjacency [num_dst, num_src] plus 1/deg for
    PyG-style 'mean' aggregation over edges (src -> dst)."""
    src, dst = edge_index[0], edge_index[1]
    a = jnp.zeros((num_dst, num_src), jnp.float32).at[dst, src].add(1.0)
    deg = jnp.clip(jnp.sum(a, axis=1), 1.0, None)
    return a, 1.0 / deg


def reference_forward_f32(x, a1_cnt, invd1, w1, b1, a2_cnt, invd2, w2, b2):
    a1 = a1_cnt * invd1[:, None]
    a2 = a2_cnt * invd2[:, None]
    h1 = jnp.maximum(a1 @ x @ w1.T + b1, 0.0)
    h2 = a2 @ h1 @ w2.T + b2
    return jax.nn.log_softmax(h2, axis=1)


def reference_forward_matched(x, a1_cnt, invd1, w1, b1, a2_cnt, invd2, w2, b2):
    """Same math with the kernel's bf16-input / f32-accumulate policy."""
    bf, f32 = jnp.bfloat16, jnp.float32
    xw1 = jnp.dot(x.astype(bf), w1.T.astype(bf),
                  preferred_element_type=f32).astype(bf)
    h1 = jnp.dot(a1_cnt.astype(bf), xw1, preferred_element_type=f32) \
        * invd1[:, None] + b1
    h1 = jnp.maximum(h1, 0.0).astype(bf)
    h1w2 = jnp.dot(h1, w2.T.astype(bf), preferred_element_type=f32).astype(bf)
    h2 = jnp.dot(a2_cnt.astype(bf), h1w2, preferred_element_type=f32) \
        * invd2[:, None] + b2
    return jax.nn.log_softmax(h2, axis=1)


if __name__ == "__main__":
    key = jax.random.PRNGKey(0)
    k_x, k_nid, k_e1, k_e2, k_w1, k_b1, k_w2, k_b2 = jax.random.split(key, 8)

    # Small synthetic "Reddit" 2-hop neighborhood-sampling data_flow.
    N_TOTAL, C_IN, C_HID, C_OUT = 400, 32, 16, 8
    N0, N1, N2 = 300, 130, 20       # hop-1 srcs / hop-1 dsts (= hop-2 srcs) / hop-2 dsts
    E1, E2 = 1500, 400

    x_all = jax.random.normal(k_x, (N_TOTAL, C_IN), jnp.float32)
    n_id = jax.random.permutation(k_nid, N_TOTAL)[:N0]
    x_gathered = x_all[n_id]        # x = x[data.n_id]  (plain-JAX glue)

    edge_index_1 = jnp.stack([
        jax.random.randint(k_e1, (E1,), 0, N0),
        jax.random.randint(jax.random.fold_in(k_e1, 1), (E1,), 0, N1),
    ])
    edge_index_2 = jnp.stack([
        jax.random.randint(k_e2, (E2,), 0, N1),
        jax.random.randint(jax.random.fold_in(k_e2, 1), (E2,), 0, N2),
    ])
    a1_cnt, invd1 = build_adjacency(edge_index_1, N0, N1)
    a2_cnt, invd2 = build_adjacency(edge_index_2, N1, N2)
    # int8 adjacency storage requires edge multiplicities <= 127.
    assert float(jnp.max(a1_cnt)) <= 127 and float(jnp.max(a2_cnt)) <= 127

    # Deterministic parameter init (SAGEConv.lin_l weights/biases).
    w1 = 0.1 * jax.random.normal(k_w1, (C_HID, C_IN), jnp.float32)
    b1 = 0.1 * jax.random.normal(k_b1, (C_HID,), jnp.float32)
    w2 = 0.1 * jax.random.normal(k_w2, (C_OUT, C_HID), jnp.float32)
    b2 = 0.1 * jax.random.normal(k_b2, (C_OUT,), jnp.float32)

    out = sagenet_forward(x_gathered, a1_cnt, invd1, w1, b1, a2_cnt, invd2, w2, b2)
    out = jax.block_until_ready(out)
    assert out.shape == (N2, C_OUT)

    ref_match = reference_forward_matched(x_gathered, a1_cnt, invd1, w1, b1,
                                          a2_cnt, invd2, w2, b2)
    ref_exact = reference_forward_f32(x_gathered, a1_cnt, invd1, w1, b1,
                                      a2_cnt, invd2, w2, b2)
    # Tight check vs a precision-matched reference, loose check vs full-f32 math.
    assert jnp.allclose(out, ref_match, atol=2e-3, rtol=2e-3), \
        float(jnp.max(jnp.abs(out - ref_match)))
    assert jnp.allclose(out, ref_exact, atol=3e-2, rtol=3e-2), \
        float(jnp.max(jnp.abs(out - ref_exact)))

    print("KERNEL_OK")
</pallas_src>

<mosaic_0001>
module attributes {stable_mosaic.version = 11 : i64} {
  func.func @_linear_kernel(%arg0: i32, %arg1: memref<384x32xbf16, #tpu.memory_space<vmem>>, %arg2: memref<32x128xbf16, #tpu.memory_space<vmem>>, %arg3: memref<384x128xbf16, #tpu.memory_space<vmem>>) attributes {dimension_semantics = [#tpu.dimension_semantics<parallel>], iteration_bounds = array<i64: 1>, scalar_prefetch = 0 : i64, scratch_operands = 0 : i64, tpu.core_type = #tpu.core_type<tc>, window_params = [{transform_indices = @transform_0, window_bounds = array<i64: 384, 32>}, {pipeline_mode = #tpu.pipeline_mode<synchronous>, transform_indices = @transform_1, window_bounds = array<i64: 32, 128>}, {transform_indices = @transform_2, window_bounds = array<i64: 384, 128>}]} {
    %c0 = arith.constant 0 : index
    %c0_0 = arith.constant 0 : index
    %0 = vector.load %arg1[%c0, %c0_0] : memref<384x32xbf16, #tpu.memory_space<vmem>>, vector<384x32xbf16>
    %c0_1 = arith.constant 0 : index
    %c0_2 = arith.constant 0 : index
    %1 = vector.load %arg2[%c0_1, %c0_2] : memref<32x128xbf16, #tpu.memory_space<vmem>>, vector<32x128xbf16>
    %cst = arith.constant dense<0.000000e+00> : vector<384x128xf32>
    %2 = tpu.matmul %0, %1, %cst {dimension_numbers = #tpu.dot_dimension_numbers<[1], [0], [0], [1], [0, 0, 1, 1], [], []>} : vector<384x32xbf16>, vector<32x128xbf16>, vector<384x128xf32> -> vector<384x128xf32>
    %3 = arith.truncf %2 : vector<384x128xf32> to vector<384x128xbf16>
    %c0_3 = arith.constant 0 : index
    %c0_4 = arith.constant 0 : index
    %4 = vector.load %arg3[%c0_3, %c0_4] : memref<384x128xbf16, #tpu.memory_space<vmem>>, vector<384x128xbf16>
    tpu.vector_store %arg3[%c0_3, %c0_4], %3 {strides = array<i32>} : memref<384x128xbf16, #tpu.memory_space<vmem>>, vector<384x128xbf16>,
    return
  }
  func.func @transform_0(%arg0: i32) -> (i32, i32) {
    %c0_i32 = arith.constant 0 : i32
    %c0_i32_0 = arith.constant 0 : i32
    return %arg0, %c0_i32 : i32, i32
  }
  func.func @transform_1(%arg0: i32) -> (i32, i32) {
    %c0_i32 = arith.constant 0 : i32
    %c0_i32_0 = arith.constant 0 : i32
    %c0_i32_1 = arith.constant 0 : i32
    return %c0_i32, %c0_i32_0 : i32, i32
  }
  func.func @transform_2(%arg0: i32) -> (i32, i32) {
    %c0_i32 = arith.constant 0 : i32
    %c0_i32_0 = arith.constant 0 : i32
    return %arg0, %c0_i32 : i32, i32
  }
}

</mosaic_0001>

<bundles_post_ra>
// kernel: tpu_custom_call.1
= control target key start
LH: loop header
LB: loop body
LE: loop exit
PB: predicated region body
PF: predicated region fallthrough
CT: control target
= control target key end

     0   :  { %vm197_vm0 = vcmask 261120   ;;  %s1296_s0 = inlined_call_operand.vmem [shape: bf16[384,32], index: 0, kind: input, shape index: {}]   ;;  %s1297_s1 = inlined_call_operand.vmem [shape: bf16[32,128], index: 1, kind: input, shape index: {}]   ;;  %s1298_s2 = inlined_call_operand.hbm [shape: bf16[384,128], index: 2, kind: output, shape index: {}]  }
   0x1   :  { %v1125_v0 = vld [vmem:[%s1297_s1 + $0x8] sm:$0xff]   ;;  %v1126_v1 = vld [vmem:[%s1297_s1] sm:$0xff]   ;;  %v1131_v6 = vld [vmem:[%s1296_s0 + $0x10] sm:$0xff]  }
   0x2   :  { %1066 = vmatprep.subr.bf16.mxu0 %v1125_v0  ;;  %1118 = vmatprep.subr.bf16.mxu1 %v1125_v0  ;;  %v1127_v2 = vld [vmem:[%s1296_s0] sm:$0xff]   ;;  %v1129_v4 = vld [vmem:[%s1296_s0 + $0x8] sm:$0xff]   ;;  %v1132_v7 = vld [vmem:[%s1296_s0 + $0x70] sm:$0xff]  }
   0x3   :  { %1067 = vmatpush3.bf16.msra.mxu0 %v1125_v0  ;;  %1120 = vmatpush3.bf16.msra.mxu1 %v1125_v0  ;;  %v1128_v3 = vld [vmem:[%s1296_s0 + $0x60] sm:$0xff]   ;;  %v1130_v5 = vld [vmem:[%s1296_s0 + $0x68] sm:$0xff]   ;;  %v1133_v8 = vld [vmem:[%s1296_s0 + $0x18] sm:$0xff]  }
   0x4   :  { %1068 = vmatprep.subr.bf16.mxu0 %v1126_v1  ;;  %1119 = vmatprep.subr.bf16.mxu1 %v1126_v1  ;;  %v1134_v9 = vld [vmem:[%s1296_s0 + $0x78] sm:$0xff]   ;;  %v1135_v10 = vld [vmem:[%s1296_s0 + $0x20] sm:$0xff]   ;;  %v1137_v12 = vld [vmem:[%s1296_s0 + $0x28] sm:$0xff]  }
   0x5   :  { %1070 = vmatprep.mubr.msk.bf16.mxu0 %vm197_vm0, %v1127_v2  ;;  %1094 = vmatprep.mubr.msk.bf16.mxu1 %vm197_vm0, %v1128_v3  ;;  %v1136_v11 = vld [vmem:[%s1296_s0 + $0x80] sm:$0xff]   ;;  %v1138_v13 = vld [vmem:[%s1296_s0 + $0x88] sm:$0xff]   ;;  %v1139_v14 = vld [vmem:[%s1296_s0 + $0x30] sm:$0xff]  }
   0x6   :  { %v1140_v15 = vld [vmem:[%s1296_s0 + $0x90] sm:$0xff]  }
   0x7   :  { %1069 = vmatpush3.bf16.msra.mxu0 %v1126_v1  ;;  %1121 = vmatpush3.bf16.msra.mxu1 %v1126_v1 }
   0xa   :  { %1071 = vmatmul.mubr.msk.bf16.vlgmr.msra.gmra.mxu0 %vm197_vm0, %v1129_v4  ;;  %1095 = vmatmul.mubr.msk.bf16.vlgmr.msra.gmra.mxu1 %vm197_vm0, %v1130_v5 }
   0xb   :  { %1074 = vmatprep.mubr.msk.bf16.mxu0 %vm197_vm0, %v1131_v6  ;;  %1098 = vmatprep.mubr.msk.bf16.mxu1 %vm197_vm0, %v1132_v7 }
  0x12   :  { %1075 = vmatmul.mubr.msk.bf16.gmra.mxu0 %vm197_vm0, %v1133_v8  ;;  %1099 = vmatmul.mubr.msk.bf16.gmra.mxu1 %vm197_vm0, %v1134_v9 }
  0x13   :  { %1078 = vmatprep.mubr.msk.bf16.mxu0 %vm197_vm0, %v1135_v10  ;;  %1102 = vmatprep.mubr.msk.bf16.mxu1 %vm197_vm0, %v1136_v11 }
  0x1a   :  { %1079 = vmatmul.mubr.msk.bf16.gmra.mxu0 %vm197_vm0, %v1137_v12  ;;  %1103 = vmatmul.mubr.msk.bf16.gmra.mxu1 %vm197_vm0, %v1138_v13 }
  0x1b   :  { %7 = vsyncpa [#allocation3], 0  ;;  %1082 = vmatprep.mubr.msk.bf16.mxu0 %vm197_vm0, %v1139_v14  ;;  %1106 = vmatprep.mubr.msk.bf16.mxu1 %vm197_vm0, %v1140_v15  ;;  %v1141_v16 = vld [vmem:[%s1296_s0 + $0x38] sm:$0xff]   ;;  %v1143_v18 = vld [vmem:[%s1296_s0 + $0x40] sm:$0xff]  }
  0x1c   :  { %v1142_v17 = vld [vmem:[%s1296_s0 + $0x98] sm:$0xff]   ;;  %v1144_v19 = vld [vmem:[%s1296_s0 + $0xa0] sm:$0xff]   ;;  %v1145_v20 = vld [vmem:[%s1296_s0 + $0x48] sm:$0xff]  }
  0x1d   :  { %v1146_v21 = vld [vmem:[%s1296_s0 + $0xa8] sm:$0xff]   ;;  %v1147_v22 = vld [vmem:[%s1296_s0 + $0x50] sm:$0xff]   ;;  %v1149_v24 = vld [vmem:[%s1296_s0 + $0x58] sm:$0xff]  }
  0x1e   :  { %v1148_v23 = vld [vmem:[%s1296_s0 + $0xb0] sm:$0xff]   ;;  %v1150_v25 = vld [vmem:[%s1296_s0 + $0xb8] sm:$0xff]   ;;  %s1173_s0 = smov [#allocation2]  }
  0x1f   :  { %s740_s3 = sshll.u32 %s1173_s0, 4  ;;  %s741_s3 = int_to_ptr.vmem [resolvable:$true] %s740_s3 }
  0x20   :  { %s1151_s4 = scalar_lea.vmem %s741_s3, 3072  ;;  %p1156_p1 = scmp.lt.s32.totalorder %s741_s3, %s741_s3 }
  0x21   :  { %p1152_p0 = scmp.ne.s32.totalorder %s741_s3, %s1151_s4  ;;  %p1157_p2 = scmp.lt.s32.totalorder %s1151_s4, %s1151_s4 }
  0x22   :  { %1083 = vmatmul.mubr.msk.bf16.gmra.mxu0 %vm197_vm0, %v1141_v16  ;;  %1107 = vmatmul.mubr.msk.bf16.gmra.mxu1 %vm197_vm0, %v1142_v17 }
  0x23   :  { %1086 = vmatprep.mubr.msk.bf16.mxu0 %vm197_vm0, %v1143_v18  ;;  %1110 = vmatprep.mubr.msk.bf16.mxu1 %vm197_vm0, %v1144_v19  ;;  %p1158_p3 = por %p1157_p2, %p1156_p1 }
  0x25   :  { %p1159_p4 = pnand %p1158_p3, %p1152_p0 }
  0x2a   :  { %1087 = vmatmul.mubr.msk.bf16.gmra.mxu0 %vm197_vm0, %v1145_v20  ;;  %1111 = vmatmul.mubr.msk.bf16.gmra.mxu1 %vm197_vm0, %v1146_v21 }
  0x2b   :  { %1090 = vmatprep.mubr.msk.bf16.mxu0 %vm197_vm0, %v1147_v22  ;;  %1114 = vmatprep.mubr.msk.bf16.mxu1 %vm197_vm0, %v1148_v23 }
  0x32   :  { %1091 = vmatmul.mubr.msk.bf16.gmra.mxu0 %vm197_vm0, %v1149_v24  ;;  %1115 = vmatmul.mubr.msk.bf16.gmra.mxu1 %vm197_vm0, %v1150_v25 }
  0xca   :  { %v1072_v26 = vpop.f32.mrf.mxu0  ;;  %v1096_v27 = vpop.f32.mrf.mxu1 }
  0xcc   :  { %v304_v28 = vpop.f32.mrf.mxu0  ;;  %v400_v29 = vpop.f32.mrf.mxu1 }
  0xce   :  { %v1073_v30 = vpop.f32.mrf.mxu0  ;;  %v1097_v31 = vpop.f32.mrf.mxu1 }
  0xcf   :  { %v905_v32 = vpack.c.bf16 %v1073_v30, %v1072_v26  ;;  %v965_v33 = vpack.c.bf16 %v1097_v31, %v1096_v27 }
  0xd0   :  { %v307_v34 = vpop.f32.mrf.mxu0  ;;  %v403_v35 = vpop.f32.mrf.mxu1 }
  0xd1   :  { %1017 = vst [vmem:[#allocation2 + $0x8] sm:$0xff] %v905_v32   ;;  %1029 = vst [vmem:[#allocation2 + $0x68] sm:$0xff] %v965_v33   ;;  %v900_v36 = vpack.c.bf16 %v307_v34, %v304_v28  ;;  %v960_v37 = vpack.c.bf16 %v403_v35, %v400_v29 }
  0xd2   :  { %v1076_v38 = vpop.f32.mrf.mxu0  ;;  %v1100_v39 = vpop.f32.mrf.mxu1 }
  0xd3   :  { %901 = vst [vmem:[#allocation2] sm:$0xff] %v900_v36   ;;  %1028 = vst [vmem:[#allocation2 + $0x60] sm:$0xff] %v960_v37  }
  0xd4   :  { %v320_v40 = vpop.f32.mrf.mxu0  ;;  %v416_v41 = vpop.f32.mrf.mxu1 }
  0xd6   :  { %v1077_v42 = vpop.f32.mrf.mxu0  ;;  %v1101_v43 = vpop.f32.mrf.mxu1 }
  0xd7   :  { %v915_v44 = vpack.c.bf16 %v1077_v42, %v1076_v38  ;;  %v975_v45 = vpack.c.bf16 %v1101_v43, %v1100_v39 }
  0xd8   :  { %v323_v46 = vpop.f32.mrf.mxu0  ;;  %v419_v47 = vpop.f32.mrf.mxu1 }
  0xd9   :  { %1019 = vst [vmem:[#allocation2 + $0x18] sm:$0xff] %v915_v44   ;;  %1031 = vst [vmem:[#allocation2 + $0x78] sm:$0xff] %v975_v45   ;;  %v910_v48 = vpack.c.bf16 %v323_v46, %v320_v40  ;;  %v970_v49 = vpack.c.bf16 %v419_v47, %v416_v41 }
  0xda   :  { %v1080_v50 = vpop.f32.mrf.mxu0  ;;  %v1104_v51 = vpop.f32.mrf.mxu1 }
  0xdb   :  { %1018 = vst [vmem:[#allocation2 + $0x10] sm:$0xff] %v910_v48   ;;  %1030 = vst [vmem:[#allocation2 + $0x70] sm:$0xff] %v970_v49  }
  0xdc   :  { %v336_v52 = vpop.f32.mrf.mxu0  ;;  %v432_v53 = vpop.f32.mrf.mxu1 }
  0xde   :  { %v1081_v54 = vpop.f32.mrf.mxu0  ;;  %v1105_v55 = vpop.f32.mrf.mxu1 }
  0xdf   :  { %v925_v56 = vpack.c.bf16 %v1081_v54, %v1080_v50  ;;  %v985_v57 = vpack.c.bf16 %v1105_v55, %v1104_v51 }
  0xe0   :  { %v339_v58 = vpop.f32.mrf.mxu0  ;;  %v435_v59 = vpop.f32.mrf.mxu1 }
  0xe1   :  { %1021 = vst [vmem:[#allocation2 + $0x28] sm:$0xff] %v925_v56   ;;  %1033 = vst [vmem:[#allocation2 + $0x88] sm:$0xff] %v985_v57   ;;  %v920_v60 = vpack.c.bf16 %v339_v58, %v336_v52  ;;  %v980_v61 = vpack.c.bf16 %v435_v59, %v432_v53 }
  0xe2   :  { %v1084_v62 = vpop.f32.mrf.mxu0  ;;  %v1108_v63 = vpop.f32.mrf.mxu1 }
  0xe3   :  { %1020 = vst [vmem:[#allocation2 + $0x20] sm:$0xff] %v920_v60   ;;  %1032 = vst [vmem:[#allocation2 + $0x80] sm:$0xff] %v980_v61  }
  0xe4   :  { %v352_v0 = vpop.f32.mrf.mxu0  ;;  %v448_v1 = vpop.f32.mrf.mxu1 }
  0xe6   :  { %v1085_v2 = vpop.f32.mrf.mxu0  ;;  %v1109_v3 = vpop.f32.mrf.mxu1 }
  0xe7   :  { %v935_v4 = vpack.c.bf16 %v1085_v2, %v1084_v62  ;;  %v995_v5 = vpack.c.bf16 %v1109_v3, %v1108_v63 }
  0xe8   :  { %v355_v6 = vpop.f32.mrf.mxu0  ;;  %v451_v7 = vpop.f32.mrf.mxu1 }
  0xe9   :  { %1023 = vst [vmem:[#allocation2 + $0x38] sm:$0xff] %v935_v4   ;;  %1035 = vst [vmem:[#allocation2 + $0x98] sm:$0xff] %v995_v5   ;;  %v930_v8 = vpack.c.bf16 %v355_v6, %v352_v0  ;;  %v990_v9 = vpack.c.bf16 %v451_v7, %v448_v1 }
  0xea   :  { %v1088_v10 = vpop.f32.mrf.mxu0  ;;  %v1112_v11 = vpop.f32.mrf.mxu1 }
  0xeb   :  { %1022 = vst [vmem:[#allocation2 + $0x30] sm:$0xff] %v930_v8   ;;  %1034 = vst [vmem:[#allocation2 + $0x90] sm:$0xff] %v990_v9  }
  0xec   :  { %v368_v12 = vpop.f32.mrf.mxu0  ;;  %v464_v13 = vpop.f32.mrf.mxu1 }
  0xee   :  { %v1089_v14 = vpop.f32.mrf.mxu0  ;;  %v1113_v15 = vpop.f32.mrf.mxu1 }
  0xef   :  { %v945_v16 = vpack.c.bf16 %v1089_v14, %v1088_v10  ;;  %v1005_v17 = vpack.c.bf16 %v1113_v15, %v1112_v11 }
  0xf0   :  { %v371_v18 = vpop.f32.mrf.mxu0  ;;  %v467_v19 = vpop.f32.mrf.mxu1 }
  0xf1   :  { %1025 = vst [vmem:[#allocation2 + $0x48] sm:$0xff] %v945_v16   ;;  %1037 = vst [vmem:[#allocation2 + $0xa8] sm:$0xff] %v1005_v17   ;;  %v940_v20 = vpack.c.bf16 %v371_v18, %v368_v12  ;;  %v1000_v21 = vpack.c.bf16 %v467_v19, %v464_v13 }
  0xf2   :  { %v1092_v22 = vpop.f32.mrf.mxu0  ;;  %v1116_v23 = vpop.f32.mrf.mxu1 }
  0xf3   :  { %1024 = vst [vmem:[#allocation2 + $0x40] sm:$0xff] %v940_v20   ;;  %1036 = vst [vmem:[#allocation2 + $0xa0] sm:$0xff] %v1000_v21  }
  0xf4   :  { %v384_v24 = vpop.f32.mrf.mxu0  ;;  %v480_v25 = vpop.f32.mrf.mxu1 }
  0xf6   :  { %v1093_v26 = vpop.f32.mrf.mxu0  ;;  %v1117_v27 = vpop.f32.mrf.mxu1 }
  0xf7   :  { %v955_v28 = vpack.c.bf16 %v1093_v26, %v1092_v22  ;;  %v1015_v29 = vpack.c.bf16 %v1117_v27, %v1116_v23 }
  0xf8   :  { %v387_v30 = vpop.f32.mrf.mxu0  ;;  %v483_v31 = vpop.f32.mrf.mxu1 }
  0xf9   :  { %1027 = vst [vmem:[#allocation2 + $0x58] sm:$0xff] %v955_v28   ;;  %1039 = vst [vmem:[#allocation2 + $0xb8] sm:$0xff] %v1015_v29   ;;  %v950_v32 = vpack.c.bf16 %v387_v30, %v384_v24  ;;  %v1010_v33 = vpack.c.bf16 %v483_v31, %v480_v25 }
  0xfb   :  { %1026 = vst [vmem:[#allocation2 + $0x50] sm:$0xff] %v950_v32   ;;  %1038 = vst [vmem:[#allocation2 + $0xb0] sm:$0xff] %v1010_v33  }
  0xfc   :  { %1162 = shalt.err (!%p1159_p4)
}
  0xfd   :  { %s1174_s5 = smov 64   ;;  %s1175_s6 = smov 4  }
  0xfe   :  { %746 = dma.vmem_to_hbm [thread:$0]  %s741_s3, 3072, %s1298_s2, [#allocation3], %s1174_s5, %s1174_s5, %s1175_s6  }
  0xff   :  { %1171 = dma.done.wait [#allocation3], 3072  }
 0x100   :  { %1172 = vsyncadd [#allocation3], 4294964224 }
 0x101   :  { %750 = vsyncpa [#allocation3], 1 }

</bundles_post_ra>
